<compile_context>
chip_gen: v7x
topology: tpu7x:2x2x1
jax: 0.10.0
libtpu: 0.0.40
codegen_flags: <defaults>
</compile_context>

<pallas_src>
import math
import jax
import jax.numpy as jnp
from jax.experimental import pallas as pl
from jax.experimental.pallas import tpu as pltpu


def _olayer_kernel(x_ref, w_ref, b_ref, o_ref):
    # Single fused matmul on the MXU: (TB, D_in) @ (D_in, 2*D_out) -> (TB, 2*D_out)
    y = jnp.dot(x_ref[...], w_ref[...], preferred_element_type=jnp.float32)
    y = jnp.cos(y + b_ref[...])                 # bias + cos in f32 (VPU/EUP)
    d = o_ref.shape[-1]
    o_ref[...] = y[:, :d] + y[:, d:]            # fold the left/right halves


def prepare_olayer_params(wl, bl, wr, br, freq=math.pi, mxu_dtype=jnp.bfloat16):
    """Fold freq into the (pre-transposed) weights/biases and fuse l|r.

    wl/wr: (D_in, D_out) f32, bl/br: (D_out,) f32.
    Returns (w_cat, b_cat): (D_in, 2*D_out) mxu_dtype, (1, 2*D_out) f32.
    Do this ONCE per parameter set; it is amortized over all forward calls.
    """
    w_cat = (jnp.concatenate([wl, wr], axis=1) * freq).astype(mxu_dtype)
    b_cat = (jnp.concatenate([bl, br]) * freq).astype(jnp.float32).reshape(1, -1)
    return w_cat, b_cat


def olayer_forward(xp, w_cat, b_cat, *, batch_tile=None):
    """xp: (B, D_in); w_cat: (D_in, 2*D_out); b_cat: (1, 2*D_out)."""
    B, D_in = xp.shape
    two_d_out = w_cat.shape[1]
    D_out = two_d_out // 2

    # Tile the batch axis. Full-array block if B is small (legal block shape),
    # otherwise 256-row tiles (comfortably inside v7x's 64 MiB VMEM budget
    # even with double buffering; the fused weight tile stays resident).
    if batch_tile is None:
        batch_tile = B if B <= 256 else 256
    tb = batch_tile
    grid = (pl.cdiv(B, tb),)

    x_mxu = xp.astype(w_cat.dtype)

    flops = 2 * B * D_in * two_d_out
    bytes_accessed = (x_mxu.size * x_mxu.dtype.itemsize
                      + w_cat.size * w_cat.dtype.itemsize
                      + b_cat.size * 4 + B * D_out * 4)

    return pl.pallas_call(
        _olayer_kernel,
        out_shape=jax.ShapeDtypeStruct((B, D_out), jnp.float32),
        grid_spec=pltpu.PrefetchScalarGridSpec(
            num_scalar_prefetch=0,
            grid=grid,
            in_specs=[
                pl.BlockSpec((tb, D_in), lambda i: (i, 0)),         # activations: tiled
                pl.BlockSpec((D_in, two_d_out), lambda i: (0, 0)),  # fused weights: resident
                pl.BlockSpec((1, two_d_out), lambda i: (0, 0)),     # fused bias: resident
            ],
            out_specs=pl.BlockSpec((tb, D_out), lambda i: (i, 0)),
        ),
        compiler_params=pltpu.CompilerParams(
            dimension_semantics=("parallel",),      # megacore sharding on v7x
            vmem_limit_bytes=32 * 1024 * 1024,
        ),
        cost_estimate=pl.CostEstimate(
            flops=flops, transcendentals=B * two_d_out,
            bytes_accessed=bytes_accessed),
    )(x_mxu, w_cat, b_cat)


def init_olayer_params(key, hidden_dim=(128, 64)):
    """Deterministic nn.Linear-style init: U(-1/sqrt(fan_in), 1/sqrt(fan_in))."""
    d_in, d_out = hidden_dim
    bound = 1.0 / math.sqrt(d_in)
    kl_w, kl_b, kr_w, kr_b, km_w, km_b = jax.random.split(key, 6)
    # weights stored pre-transposed to (in, out) for the kernel
    wl = jax.random.uniform(kl_w, (d_in, d_out), jnp.float32, -bound, bound)
    bl = jax.random.uniform(kl_b, (d_out,), jnp.float32, -bound, bound)
    wr = jax.random.uniform(kr_w, (d_in, d_out), jnp.float32, -bound, bound)
    br = jax.random.uniform(kr_b, (d_out,), jnp.float32, -bound, bound)
    # fc1m parameters exist in the module but are unused in forward.
    wm = jax.random.uniform(km_w, (d_in, d_out), jnp.float32, -bound, bound)
    bm = jax.random.uniform(km_b, (d_out,), jnp.float32, -bound, bound)
    return dict(wl=wl, bl=bl, wr=wr, br=br, wm=wm, bm=bm)


if __name__ == "__main__":
    key = jax.random.PRNGKey(0)
    k_x, k_p = jax.random.split(key)

    hidden_dim = (128, 64)
    batch = 8
    xp = jax.random.normal(k_x, (batch, hidden_dim[0]), jnp.float32)
    params = init_olayer_params(k_p, hidden_dim)

    # One-time parameter prep: fuse l|r, fold in freq, cast to MXU dtype.
    w_cat, b_cat = prepare_olayer_params(
        params["wl"], params["bl"], params["wr"], params["br"], freq=math.pi)

    out = olayer_forward(xp, w_cat, b_cat)
    out = jax.block_until_ready(out)
    assert out.shape == (batch, hidden_dim[1])

    # Reference 1: bf16-consistent reference (same operand dtypes as kernel).
    y_ref = jnp.dot(xp.astype(w_cat.dtype), w_cat,
                    preferred_element_type=jnp.float32) + b_cat
    y_ref = jnp.cos(y_ref)
    ref_bf16 = y_ref[:, :hidden_dim[1]] + y_ref[:, hidden_dim[1]:]
    assert jnp.allclose(out, ref_bf16, atol=2e-3, rtol=2e-3)

    # Reference 2: exact f32 module semantics (loose tol for bf16 operands).
    ref_f32 = (jnp.cos(math.pi * (xp @ params["wl"] + params["bl"])) +
               jnp.cos(math.pi * (xp @ params["wr"] + params["br"])))
    assert jnp.allclose(out, ref_f32, atol=5e-2, rtol=5e-2)

    print("KERNEL_OK")
</pallas_src>

<mosaic_0001>
module attributes {stable_mosaic.version = 11 : i64} {
  func.func @_olayer_kernel(%arg0: i32, %arg1: memref<8x128xbf16, #tpu.memory_space<vmem>>, %arg2: memref<128x128xbf16, #tpu.memory_space<vmem>>, %arg3: memref<1x128xf32, #tpu.memory_space<vmem>>, %arg4: memref<8x64xf32, #tpu.memory_space<vmem>>) attributes {dimension_semantics = [#tpu.dimension_semantics<parallel>], iteration_bounds = array<i64: 1>, scalar_prefetch = 0 : i64, scratch_operands = 0 : i64, tpu.core_type = #tpu.core_type<tc>, window_params = [{transform_indices = @transform_0, window_bounds = array<i64: 8, 128>}, {pipeline_mode = #tpu.pipeline_mode<synchronous>, transform_indices = @transform_1, window_bounds = array<i64: 128, 128>}, {pipeline_mode = #tpu.pipeline_mode<synchronous>, transform_indices = @transform_2, window_bounds = array<i64: 1, 128>}, {transform_indices = @transform_3, window_bounds = array<i64: 8, 64>}]} {
    %c0 = arith.constant 0 : index
    %c0_0 = arith.constant 0 : index
    %0 = vector.load %arg1[%c0, %c0_0] : memref<8x128xbf16, #tpu.memory_space<vmem>>, vector<8x128xbf16>
    %c0_1 = arith.constant 0 : index
    %c0_2 = arith.constant 0 : index
    %1 = vector.load %arg2[%c0_1, %c0_2] : memref<128x128xbf16, #tpu.memory_space<vmem>>, vector<128x128xbf16>
    %cst = arith.constant dense<0.000000e+00> : vector<8x128xf32>
    %2 = tpu.matmul %0, %1, %cst {dimension_numbers = #tpu.dot_dimension_numbers<[1], [0], [0], [1], [0, 0, 1, 1], [], []>} : vector<8x128xbf16>, vector<128x128xbf16>, vector<8x128xf32> -> vector<8x128xf32>
    %c0_3 = arith.constant 0 : index
    %c0_4 = arith.constant 0 : index
    %3 = vector.load %arg3[%c0_3, %c0_4] : memref<1x128xf32, #tpu.memory_space<vmem>>, vector<1x128xf32>
    %4 = vector.broadcast %3 : vector<1x128xf32> to vector<8x128xf32>
    %5 = arith.addf %2, %4 : vector<8x128xf32>
    %6 = math.cos %5 : vector<8x128xf32>
    %7 = vector.extract_strided_slice %6 {offsets = [0, 0], sizes = [8, 64], strides = [1, 1]} : vector<8x128xf32> to vector<8x64xf32>
    %8 = vector.extract_strided_slice %6 {offsets = [0, 64], sizes = [8, 64], strides = [1, 1]} : vector<8x128xf32> to vector<8x64xf32>
    %9 = arith.addf %7, %8 : vector<8x64xf32>
    %c0_5 = arith.constant 0 : index
    %c0_6 = arith.constant 0 : index
    %10 = vector.load %arg4[%c0_5, %c0_6] : memref<8x64xf32, #tpu.memory_space<vmem>>, vector<8x64xf32>
    tpu.vector_store %arg4[%c0_5, %c0_6], %9 {strides = array<i32>} : memref<8x64xf32, #tpu.memory_space<vmem>>, vector<8x64xf32>,
    return
  }
  func.func @transform_0(%arg0: i32) -> (i32, i32) {
    %c0_i32 = arith.constant 0 : i32
    %c0_i32_0 = arith.constant 0 : i32
    return %arg0, %c0_i32 : i32, i32
  }
  func.func @transform_1(%arg0: i32) -> (i32, i32) {
    %c0_i32 = arith.constant 0 : i32
    %c0_i32_0 = arith.constant 0 : i32
    %c0_i32_1 = arith.constant 0 : i32
    return %c0_i32, %c0_i32_0 : i32, i32
  }
  func.func @transform_2(%arg0: i32) -> (i32, i32) {
    %c0_i32 = arith.constant 0 : i32
    %c0_i32_0 = arith.constant 0 : i32
    %c0_i32_1 = arith.constant 0 : i32
    return %c0_i32, %c0_i32_0 : i32, i32
  }
  func.func @transform_3(%arg0: i32) -> (i32, i32) {
    %c0_i32 = arith.constant 0 : i32
    %c0_i32_0 = arith.constant 0 : i32
    return %arg0, %c0_i32 : i32, i32
  }
}

</mosaic_0001>

<bundles_post_ra>
// kernel: tpu_custom_call.1
= control target key start
LH: loop header
LB: loop body
LE: loop exit
PB: predicated region body
PF: predicated region fallthrough
CT: control target
= control target key end

     0   :  { %8 = vsyncpa [#allocation3], 0  ;;  %s526_s0 = inlined_call_operand.hbm [shape: bf16[8,128], index: 0, kind: input, shape index: {}]   ;;  %s527_s1 = inlined_call_operand.hbm [shape: bf16[128,128], index: 1, kind: input, shape index: {}]   ;;  %s528_s2 = inlined_call_operand.vmem [shape: f32[1,128], index: 2, kind: input, shape index: {}]   ;;  %s529_s3 = inlined_call_operand.hbm [shape: f32[8,64], index: 3, kind: output, shape index: {}]  }
   0x1   :  { %9 = vsyncpa [#allocation6], 0 }
   0x2   :  { %10 = vsyncpa [#allocation4], 0  ;;  %s423_s12 = smov [#allocation2]   ;;  %s424_s14 = smov [#allocation5]  }
   0x3   :  { %s17_s13 = sshll.u32 %s423_s12, 4  ;;  %s26_s15 = sshll.u32 %s424_s14, 4  ;;  %s18_s13 = int_to_ptr.vmem [resolvable:$true] %s17_s13  ;;  %s456_s15 = int_to_ptr.vmem [resolvable:$true] %s26_s15 }
   0x4   :  { %s351_s18 = scalar_lea.hbm %s526_s0, 64 }
   0x5   :  { %p352_p0 = scmp.ne.s32.totalorder %s526_s0, %s351_s18  ;;  %p355_p1 = scmp.lt.u32.totalorder %s351_s18, %s526_s0 }
   0x7   :  { %p357_p2 = pnand %p355_p1, %p352_p0 }
   0x9   :  { %360 = shalt.err (!%p357_p2)
}
   0xa   :  { %s361_s23 = scalar_lea.vmem %s18_s13, 64  ;;  %p366_p4 = scmp.lt.s32.totalorder %s18_s13, %s18_s13 }
   0xb   :  { %p362_p3 = scmp.ne.s32.totalorder %s18_s13, %s361_s23  ;;  %p367_p5 = scmp.lt.s32.totalorder %s361_s23, %s361_s23 }
   0xd   :  { %p368_p6 = por %p367_p5, %p366_p4 }
   0xf   :  { %p369_p7 = pnand %p368_p6, %p362_p3 }
  0x11   :  { %372 = shalt.err (!%p369_p7)
}
  0x12   :  { %20 = dma.hbm_to_vmem [thread:$0]  %s526_s0, 64, %s18_s13, [#allocation3]  }
  0x13   :  { %s373_s28 = scalar_lea.hbm %s527_s1, 1024 }
  0x14   :  { %p374_p8 = scmp.ne.s32.totalorder %s527_s1, %s373_s28  ;;  %p377_p9 = scmp.lt.u32.totalorder %s373_s28, %s527_s1 }
  0x16   :  { %p379_p10 = pnand %p377_p9, %p374_p8 }
  0x18   :  { %382 = shalt.err (!%p379_p10)
}
  0x19   :  { %s383_s6 = scalar_lea.vmem %s456_s15, 1024  ;;  %p388_p12 = scmp.lt.s32.totalorder %s456_s15, %s456_s15 }
  0x1a   :  { %p384_p11 = scmp.ne.s32.totalorder %s456_s15, %s383_s6  ;;  %p389_p13 = scmp.lt.s32.totalorder %s383_s6, %s383_s6 }
  0x1c   :  { %p390_p0 = por %p389_p13, %p388_p12 }
  0x1e   :  { %p391_p1 = pnand %p390_p0, %p384_p11 }
  0x20   :  { %394 = shalt.err (!%p391_p1)
}
  0x21   :  { %s425_s0 = smov 64   ;;  %s426_s7 = smov 4  }
  0x22   :  { %32 = dma.hbm_to_vmem [thread:$0]  %s527_s1, 1024, %s456_s15, [#allocation6], %s425_s0, %s425_s0, %s426_s7  }
  0x23   :  { %417 = dma.done.wait [#allocation3], 64  }
  0x24   :  { %418 = vsyncadd [#allocation3], 4294967232 }
  0x25   :  { %419 = dma.done.wait [#allocation6], 1024  }
  0x26   :  { %420 = vsyncadd [#allocation6], 4294966272  ;;  %v427_v0 = vmov 0.0   ;;  %vm428_vm0 = vmmov 0   ;;  %v339_v1 = vld [vmem:[#allocation5] sm:$0xff]   ;;  %v340_v2 = vld [vmem:[#allocation5 + $0x8] sm:$0xff]  }
  0x27   :  { %302 = vmatprep.subr.bf16.mxu0 %v427_v0  ;;  %318 = vmatprep.mubr.msk.bf16.mxu0 %vm428_vm0, %v427_v0  ;;  %v341_v3 = vld [vmem:[#allocation5 + $0x10] sm:$0xff]   ;;  %v342_v4 = vld [vmem:[#allocation5 + $0x18] sm:$0xff]   ;;  %v343_v5 = vld [vmem:[#allocation5 + $0x20] sm:$0xff]   ;;  %v429_v27 = vmov 2102212464   ;;  %vm262_vm14 = vcmask 523264  }
  0x28   :  { %303 = vmatpush3.bf16.msra.mxu0 %v339_v1  ;;  %v344_v6 = vld [vmem:[#allocation5 + $0x28] sm:$0xff]   ;;  %v345_v7 = vld [vmem:[#allocation5 + $0x30] sm:$0xff]   ;;  %v346_v8 = vld [vmem:[#allocation5 + $0x38] sm:$0xff]   ;;  %v430_v29 = vmov 920167782  }
  0x29   :  { %304 = vmatprep.subr.bf16.mxu0 %v427_v0  ;;  %v42_v9 = vld [vmem:[#allocation2] sm:$0xf]  ;;  %v431_v33 = vmov 1326507024   ;;  %v432_v35 = vmov 683565275  }
  0x2a   :  { %v280_v10 = vld [vmem:[%s528_s2] ss:$0 sm:$0xff]  ;;  %v433_v37 = vmov 2475754826   ;;  %v434_v40 = vmov 2131351028  }
  0x2b   :  { %s435_s2 = smov [#allocation7]  }
  0x2c   :  { %305 = vmatpush3.bf16.msra.mxu0 %v340_v2  ;;  %s270_s11 = sshll.u32 %s435_s2, 4  ;;  %s271_s11 = int_to_ptr.vmem [resolvable:$true] %s270_s11 }
  0x2d   :  { %306 = vmatprep.subr.bf16.mxu0 %v427_v0  ;;  %s395_s12 = scalar_lea.vmem %s271_s11, 128  ;;  %p400_p3 = scmp.lt.s32.totalorder %s271_s11, %s271_s11 }
  0x2e   :  { %p396_p2 = scmp.ne.s32.totalorder %s271_s11, %s395_s12  ;;  %p401_p4 = scmp.lt.s32.totalorder %s395_s12, %s395_s12 }
  0x30   :  { %307 = vmatpush3.bf16.msra.mxu0 %v341_v3  ;;  %p402_p5 = por %p401_p4, %p400_p3 }
  0x31   :  { %308 = vmatprep.subr.bf16.mxu0 %v427_v0 }
  0x32   :  { %p403_p6 = pnand %p402_p5, %p396_p2 }
  0x34   :  { %309 = vmatpush3.bf16.msra.mxu0 %v342_v4 }
  0x35   :  { %310 = vmatprep.subr.bf16.mxu0 %v427_v0 }
  0x38   :  { %311 = vmatpush3.bf16.msra.mxu0 %v343_v5 }
  0x39   :  { %312 = vmatprep.subr.bf16.mxu0 %v427_v0 }
  0x3c   :  { %313 = vmatpush3.bf16.msra.mxu0 %v344_v6 }
  0x3d   :  { %314 = vmatprep.subr.bf16.mxu0 %v427_v0 }
  0x40   :  { %315 = vmatpush3.bf16.msra.mxu0 %v345_v7 }
  0x41   :  { %316 = vmatprep.subr.bf16.mxu0 %v427_v0 }
  0x44   :  { %317 = vmatpush3.bf16.msra.mxu0 %v346_v8 }
  0x47   :  { %319 = vmatmul.mubr.bf16.vlgmr.msra.gmra.mrb[0].mxu0 %v42_v9 }
 0x11a   :  { %v148_v11 = vpop.f32.mrb[0].mxu0 }
 0x11b   :  { %v492_v12 = vadd.f32 %v280_v10, %v148_v11  ;;  %v320_v13 = vpop.f32.mrb[1].mxu0 }
 0x11c   :  { %v151_v14 = vpop.f32.mrb[2].mxu0 }
 0x11d   :  { %v157_v15 = vand.u32 2139095040, %v492_v12  ;;  %v321_v16 = vpop.f32.mrb[3].mxu0  ;;  %v154_v17 = vand.u32 2147483647, %v492_v12  ;;  %vm156_vm8 = vcmp.lt.s32.totalorder %v492_v12, 0  ;;  %vm246_vm13 = vweird.f32 %v492_v12 }
 0x11f   :  { %v158_v18 = vshrl.u32 %v157_v15, 23  ;;  %v161_v20 = vand.u32 8388607, %v154_v17  ;;  %vm155_vm9 = vcmp.le.f32.partialorder %v154_v17, 0.7853982 }
 0x121   :  { %v289_v19 = vadd.s32 4294967169, %v158_v18  ;;  %v162_v23 = vor.u32 8388608, %v161_v20 }
 0x123   :  { %v164_v21 = vadd.s32 1, %v289_v19  ;;  %v202_v31 = vshll.u32 %v162_v23, 8 }
 0x125   :  { %vm165_vm1 = vcmp.gt.s32.totalorder %v164_v21, 0 }
 0x126   :  { %v166_v22 = vsel %vm165_vm1, %v164_v21, 0 }
 0x127   :  { %v168_v24 = vand.u32 31, %v166_v22  ;;  %v167_v25 = vshrl.u32 %v166_v22, 5 }
 0x129   :  { %v169_v26 = vsub.s32 32, %v168_v24  ;;  %v180_v28 = vshll.u32 %v429_v27, %v168_v24  ;;  %v183_v30 = vshll.u32 %v430_v29, %v168_v24  ;;  %v171_v36 = vshll.u32 %v432_v35, %v168_v24 }
 0x12a   :  { %v174_v39 = vshll.u32 %v433_v37, %v168_v24  ;;  %v177_v42 = vshll.u32 %v434_v40, %v168_v24  ;;  %vm189_vm2 = vcmp.lt.s32.totalorder %v167_v25, 4  ;;  %vm186_vm3 = vcmp.lt.s32.totalorder %v167_v25, 1 }
 0x12b   :  { %v181_v32 = vshrl.u32 %v430_v29, %v169_v26  ;;  %v184_v34 = vshrl.u32 %v431_v33, %v169_v26  ;;  %v172_v38 = vshrl.u32 %v433_v37, %v169_v26  ;;  %v175_v41 = vshrl.u32 %v434_v40, %v169_v26 }
 0x12c   :  { %v178_v43 = vshrl.u32 %v429_v27, %v169_v26  ;;  %v170_v47 = vshrl.u32 %v432_v35, %v169_v26  ;;  %vm187_vm4 = vcmp.lt.s32.totalorder %v167_v25, 2  ;;  %vm188_vm5 = vcmp.lt.s32.totalorder %v167_v25, 3 }
 0x12d   :  { %v182_v44 = vor.u32 %v181_v32, %v180_v28  ;;  %v185_v45 = vor.u32 %v184_v34, %v183_v30  ;;  %v173_v46 = vor.u32 %v172_v38, %v171_v36  ;;  %v176_v48 = vor.u32 %v175_v41, %v174_v39 }
 0x12e   :  { %v179_v49 = vor.u32 %v178_v43, %v177_v42 }
 0x12f   :  { %v195_v50 = vsel %vm189_vm2, %v182_v44, 920167782  ;;  %v199_v51 = vsel %vm189_vm2, %v185_v45, 1326507024  ;;  %v194_v53 = vsel %vm186_vm3, %v173_v46, %v176_v48  ;;  %v190_v56 = vsel %vm186_vm3, %v170_v47, %v173_v46 }
 0x130   :  { %v191_v52 = vsel %vm189_vm2, %v179_v49, 2102212464  ;;  %v196_v54 = vsel %vm188_vm5, %v179_v49, %v195_v50  ;;  %v198_v55 = vsel %vm186_vm3, %v176_v48, %v179_v49  ;;  %v200_v59 = vsel %vm188_vm5, %v182_v44, %v199_v51 }
 0x131   :  { %v192_v57 = vsel %vm188_vm5, %v176_v48, %v191_v52  ;;  %v197_v58 = vsel %vm187_vm4, %v194_v53, %v196_v54  ;;  %v201_v60 = vsel %vm187_vm4, %v198_v55, %v200_v59 }
 0x132   :  { %v498_v61 = vmul.u32.u64.low %v202_v31, %v197_v58  ;;  %v499_v62 = vmul.u32.u64.high %v202_v31, %v197_v58, %v498_v61  ;;  %v501_v63 = vmul.u32.u64.low %v202_v31, %v201_v60  ;;  %v502_v0 = vmul.u32.u64.high %v202_v31, %v201_v60, %v501_v63 }
 0x133   :  { %v193_v1 = vsel %vm187_vm4, %v190_v56, %v192_v57 }
 0x134   :  { %v212_v2 = vadd.s32 1, %v499_v62  ;;  %v209_v3 = vmul.u32 %v202_v31, %v193_v1  ;;  %vm211_vm6 = vc.u32 %v502_v0, %v498_v61  ;;  %v210_v16 = vadd.s32 %v498_v61, %v502_v0 }
 0x136   :  { %v213_v4 = vsel %vm211_vm6, %v212_v2, %v499_v62 }
 0x137   :  { %v214_v5 = vadd.s32 %v213_v4, %v209_v3 }
 0x139   :  { %v215_v6 = vadd.s32 536870912, %v214_v5 }
 0x13b   :  { %v216_v7 = vshrl.u32 %v215_v6, 30 }
 0x13d   :  { %v217_v8 = vshll.u32 %v216_v7, 30  ;;  %v240_v31 = vsub.s32 4, %v216_v7 }
 0x13f   :  { %v218_v9 = vsub.s32 %v214_v5, %v217_v8  ;;  %v241_v33 = vsel %vm156_vm8, %v240_v31, %v216_v7 }
 0x140   :  { %v243_v34 = vsel %vm155_vm9, 0, %v241_v33 }
 0x141   :  { %v220_v10 = vsub.s32 0, %v218_v9  ;;  %v247_v35 = vand.u32 3, %v243_v34 }
 0x143   :  { %v290_v11 = vmin.u32 %v220_v10, %v218_v9  ;;  %vm252_vm10 = vcmp.eq.s32.totalorder %v247_v35, 2  ;;  %vm249_vm11 = vcmp.eq.s32.totalorder %v247_v35, 0  ;;  %vm248_vm12 = vcmp.lt.s32.totalorder %v247_v35, 2 }
 0x145   :  { %v222_v13 = vclz %v290_v11 }
 0x147   :  { %v291_v14 = vadd.s32 4294967294, %v222_v13 }
 0x149   :  { %vm292_vm7 = vcmp.lt.s32.totalorder %v291_v14, 0 }
 0x14a   :  { %v225_v15 = vsel %vm292_vm7, 0, %v291_v14 }
 0x14b   :  { %v226_v18 = vsub.s32 32, %v225_v15  ;;  %v230_v19 = vsub.s32 4294967266, %v225_v15  ;;  %v227_v20 = vshll.u32 %v218_v9, %v225_v15 }
 0x14d   :  { %v228_v21 = vshrl.u32 %v210_v16, %v226_v18  ;;  %v231_v22 = vadd.s32 127, %v230_v19 }
 0x14f   :  { %v229_v23 = vor.u32 %v228_v21, %v227_v20  ;;  %v232_v24 = vshll.u32 %v231_v22, 23 }
 0x151   :  { %v233_v25 = vor.u32 4788187, %v232_v24  ;;  %v236_v27 = vcvt.s32.f32 %v229_v23 }
 0x153   :  { %v234_v26 = vand.u32 2147483647, %v233_v25 }
 0x155   :  { %v237_v28 = vmul.f32 %v236_v27, %v234_v26 }
 0x157   :  { %v238_v29 = vxor.u32 2147483648, %v237_v28 }
 0x159   :  { %v239_v30 = vsel %vm156_vm8, %v238_v29, %v237_v28 }
 0x15a   :  { %v242_v32 = vsel %vm155_vm9, %v492_v12, %v239_v30 }
 0x15b   :  { %347 = vcosq.f32 %v242_v32 }
 0x15c   :  { %349 = vsinq.f32 %v242_v32 }
 0x165   :  { %v348_v36 = vpop.eup %347 }
 0x166   :  { %v350_v37 = vpop.eup %349  ;;  %v253_v38 = vxor.u32 2147483648, %v348_v36 }
 0x167   :  { %v250_v39 = vxor.u32 2147483648, %v350_v37 }
 0x168   :  { %v254_v40 = vsel %vm252_vm10, %v253_v38, %v350_v37 }
 0x169   :  { %v251_v41 = vsel %vm249_vm11, %v348_v36, %v250_v39 }
 0x16a   :  { %v255_v17 = vsel %vm248_vm12, %v251_v41, %v254_v40 }
 0x16b   :  { %v256_v42 = vsel %vm246_vm13, nan, %v255_v17 }
 0x16c   :  { %258 = vrot.lane.b32.xlu0 %v256_v42, %s425_s0 }
 0x1de   :  { %v259_v43 = vpop.permute.xlu0 %258 }
 0x1df   :  { %v261_v44 = vadd.f32 %v259_v43, %v256_v42 }
 0x1e1   :  { %263 = vst.msk [vmem:[#allocation7] sm:$0xff] %vm262_vm14, %v261_v44 }
 0x1e2   :  { %406 = shalt.err (!%p403_p6)
}
 0x1e3   :  { %s407_s15 = scalar_lea.hbm %s529_s3, 128 }
 0x1e4   :  { %p408_p7 = scmp.ne.s32.totalorder %s529_s3, %s407_s15  ;;  %p411_p8 = scmp.lt.u32.totalorder %s407_s15, %s529_s3 }
 0x1e6   :  { %p413_p9 = pnand %p411_p8, %p408_p7 }
 0x1e8   :  { %416 = shalt.err (!%p413_p9)
}
 0x1e9   :  { %273 = dma.vmem_to_hbm [thread:$0]  %s271_s11, 128, %s529_s3, [#allocation4]  }
 0x1ea   :  { %421 = dma.done.wait [#allocation4], 128  }
 0x1eb   :  { %422 = vsyncadd [#allocation4], 4294967168 }
 0x1ec   :  { %277 = vsyncpa [#allocation3], 1 }
 0x1ed   :  { %278 = vsyncpa [#allocation6], 1 }
 0x1ee   :  { %279 = vsyncpa [#allocation4], 1 }

</bundles_post_ra>
